<compile_context>
chip_gen: v7x
topology: tpu7x:2x2x1
jax: 0.10.0
libtpu: 0.0.40
codegen_flags: <defaults>
</compile_context>

<pallas_src>
import math
import numpy as np
import jax
import jax.numpy as jnp
from jax.experimental import pallas as pl
from jax.experimental.pallas import tpu as pltpu

# ---- shapes consistent with the module ----
B, C, H, W = 2, 4, 16, 16          # model.channels == model.out_dim == C
HW = H * W
BC = B * C
TIMESTEPS = 1000                   # GaussianDiffusion default
# objective='pred_v', beta_schedule='sigmoid', auto_normalize=True,
# offset_noise_strength=0.0, min_snr_loss_weight=False, self_condition=False


# -------------------- schedule buffers (float64, like torch) --------------------
def sigmoid_beta_schedule_np(timesteps, start=-3.0, end=3.0, tau=1.0):
    steps = timesteps + 1
    t = np.linspace(0, timesteps, steps, dtype=np.float64) / timesteps
    sig = lambda x: 1.0 / (1.0 + np.exp(-x))
    v_start = sig(start / tau)
    v_end = sig(end / tau)
    alphas_cumprod = (-sig((t * (end - start) + start) / tau) + v_end) / (v_end - v_start)
    alphas_cumprod = alphas_cumprod / alphas_cumprod[0]
    betas = 1.0 - alphas_cumprod[1:] / alphas_cumprod[:-1]
    return np.clip(betas, 0.0, 0.999)


def make_schedule(timesteps):
    betas = sigmoid_beta_schedule_np(timesteps)
    alphas = 1.0 - betas
    ac = np.cumprod(alphas)
    sqrt_ac = np.sqrt(ac)                       # sqrt_alphas_cumprod
    sqrt_1mac = np.sqrt(1.0 - ac)               # sqrt_one_minus_alphas_cumprod
    snr = ac / (1.0 - ac)
    loss_weight = snr / (snr + 1.0)             # objective == 'pred_v', no min-snr clip
    return (jnp.asarray(sqrt_ac, jnp.float32),
            jnp.asarray(sqrt_1mac, jnp.float32),
            jnp.asarray(loss_weight, jnp.float32))


# -------------------------------- Pallas kernel --------------------------------
def diffusion_loss_kernel(xn_ref, aux_ref, wblk_ref, out_ref):
    # aux columns (one per (batch,channel) row): already gathered in the wrapper.
    a_col = aux_ref[:, 0:1]       # sqrt_alphas_cumprod[t_b]            (BC, 1)
    s_col = aux_ref[:, 1:2]       # sqrt_one_minus_alphas_cumprod[t_b]  (BC, 1)
    w_col = aux_ref[:, 2:3]       # loss_weight[t_b]                    (BC, 1)
    bias = aux_ref[:, 3:4]        # time-embedding bias                 (BC, 1)

    img = xn_ref[:, 0:HW]         # image in [0,1]                      (BC, HW)
    nz = xn_ref[:, HW:2 * HW]     # gaussian noise                      (BC, HW)

    x0 = img * 2.0 - 1.0          # normalize_to_neg_one_to_one
    x_t = a_col * x0 + s_col * nz                     # q_sample
    v = a_col * nz - s_col * x0                       # predict_v target (pred_v)

    # Synthetic denoiser (per-batch 1x1 conv + time-emb bias) on the MXU, fused with
    # the target subtraction:  diff = W_blk @ x_t + bias - v
    diff = jnp.dot(wblk_ref[...], x_t, preferred_element_type=jnp.float32) + (bias - v)

    # per-batch mean over (C*H*W), * loss_weight[t], mean over batch — all fused:
    row_sse = jnp.sum(diff * diff, axis=1, keepdims=True)        # (BC, 1)
    total = jnp.sum(row_sse * w_col)                             # scalar
    out_ref[0, 0] = total * (1.0 / (B * C * HW))


# ---------------------------------- wrapper ----------------------------------
@jax.jit
def gaussian_diffusion_forward(img_nchw, t, noise_nchw, w_model, temb_bias,
                               sqrt_ac, sqrt_1mac, loss_weight):
    # NCHW -> (B*C, H*W): pure reshape, no transpose. Pack img|noise on the lane
    # axis so the kernel gets one lane-dense (BC, 2*HW) input DMA instead of two.
    img = img_nchw.reshape(BC, HW).astype(jnp.float32)
    noise = noise_nchw.reshape(BC, HW).astype(jnp.float32)
    xn = jnp.concatenate([img, noise], axis=1)                   # (BC, 2*HW)

    # extract(schedule, t) done here (2-element gathers, fused by XLA) and packed
    # with the per-row time-embedding bias into a single (BC, 4) aux operand.
    a_col = jnp.repeat(sqrt_ac[t], C)                            # (BC,)
    s_col = jnp.repeat(sqrt_1mac[t], C)                          # (BC,)
    w_col = jnp.repeat(loss_weight[t], C)                        # (BC,)
    bias = temb_bias.reshape(BC).astype(jnp.float32)             # (BC,)
    aux = jnp.stack([a_col, s_col, w_col, bias], axis=1).astype(jnp.float32)  # (BC, 4)

    # block-diagonal 1x1-conv weight: per-batch channel mixing as one 2-D operand
    wblk = jnp.kron(jnp.eye(B, dtype=jnp.float32),
                    w_model.astype(jnp.float32))                 # (BC, BC)

    out = pl.pallas_call(
        diffusion_loss_kernel,
        out_shape=jax.ShapeDtypeStruct((1, 1), jnp.float32),
        in_specs=[
            pl.BlockSpec(memory_space=pltpu.MemorySpace.VMEM),   # xn    (BC, 2*HW)
            pl.BlockSpec(memory_space=pltpu.MemorySpace.VMEM),   # aux   (BC, 4)
            pl.BlockSpec(memory_space=pltpu.MemorySpace.VMEM),   # wblk  (BC, BC)
        ],
        out_specs=pl.BlockSpec(memory_space=pltpu.MemorySpace.SMEM),  # scalar loss
    )(xn, aux, wblk)

    return out[0, 0]                         # scalar loss (batch-mean already in-kernel)


# ------------------------------------ main ------------------------------------
if __name__ == "__main__":
    key = jax.random.PRNGKey(0)
    k_img, k_t, k_noise, k_w, k_wt = jax.random.split(key, 5)

    # schedule buffers (as registered in __init__)
    sqrt_ac, sqrt_1mac, loss_weight = make_schedule(TIMESTEPS)

    # inputs: image in [0, 1] (NCHW, like the PyTorch module)
    img = jax.random.uniform(k_img, (B, C, H, W), dtype=jnp.float32)

    # forward(): t = randint(0, num_timesteps, (b,)); noise = randn_like(x_start)
    t = jax.random.randint(k_t, (B,), 0, TIMESTEPS)
    noise = jax.random.normal(k_noise, (B, C, H, W), dtype=jnp.float32)

    # deterministic synthetic denoiser parameters (model.channels == model.out_dim == C)
    w_model = 0.1 * jax.random.normal(k_w, (C, C), dtype=jnp.float32)   # (C_out, C_in)
    w_time = 0.1 * jax.random.normal(k_wt, (C, C), dtype=jnp.float32)

    # sinusoidal time features -> per-(batch,channel) bias (JAX glue; conv is in-kernel)
    half = C // 2
    freqs = jnp.exp(-math.log(10000.0) * jnp.arange(half, dtype=jnp.float32) / max(half, 1))
    ang = t.astype(jnp.float32)[:, None] * freqs[None, :]
    temb_feat = jnp.concatenate([jnp.sin(ang), jnp.cos(ang)], axis=-1)   # (B, C)
    temb_bias = temb_feat @ w_time                                       # (B, C)

    loss = gaussian_diffusion_forward(img, t, noise, w_model, temb_bias,
                                      sqrt_ac, sqrt_1mac, loss_weight)
    loss = jax.block_until_ready(loss)

    # pure-JAX reference of the same forward pass (correctness gate)
    x0_ref = img.reshape(B, C, HW) * 2.0 - 1.0
    nz_ref = noise.reshape(B, C, HW)
    a_ref = sqrt_ac[t][:, None, None]
    s_ref = sqrt_1mac[t][:, None, None]
    xt_ref = a_ref * x0_ref + s_ref * nz_ref
    mo_ref = jnp.einsum('oc,bcl->bol', w_model, xt_ref,
                        precision=jax.lax.Precision.HIGHEST) + temb_bias[:, :, None]
    v_ref = a_ref * nz_ref - s_ref * x0_ref
    ref = jnp.mean(jnp.mean((mo_ref - v_ref) ** 2, axis=(1, 2)) * loss_weight[t])

    assert loss.shape == () and jnp.isfinite(loss)
    assert jnp.allclose(loss, ref, rtol=2e-3, atol=1e-4)
    # TODO(synk): immiscible noise assignment (scipy linear_sum_assignment), the
    # self-conditioning coin flip and offset-noise are off by default and not implemented.
    print("KERNEL_OK")
</pallas_src>

<mosaic_0001>
module attributes {stable_mosaic.version = 11 : i64} {
  func.func @diffusion_loss_kernel(%arg0: memref<8x512xf32, #tpu.memory_space<vmem>>, %arg1: memref<8x4xf32, #tpu.memory_space<vmem>>, %arg2: memref<8x8xf32, #tpu.memory_space<vmem>>, %arg3: memref<1x1xf32, #tpu.memory_space<smem>>) attributes {dimension_semantics = [], scalar_prefetch = 0 : i64, scratch_operands = 0 : i64, tpu.core_type = #tpu.core_type<tc>} {
    %c0 = arith.constant 0 : index
    %c0_0 = arith.constant 0 : index
    %0 = vector.load %arg1[%c0, %c0_0] : memref<8x4xf32, #tpu.memory_space<vmem>>, vector<8x1xf32>
    %c0_1 = arith.constant 0 : index
    %c1 = arith.constant 1 : index
    %1 = vector.load %arg1[%c0_1, %c1] : memref<8x4xf32, #tpu.memory_space<vmem>>, vector<8x1xf32>
    %c0_2 = arith.constant 0 : index
    %c2 = arith.constant 2 : index
    %2 = vector.load %arg1[%c0_2, %c2] : memref<8x4xf32, #tpu.memory_space<vmem>>, vector<8x1xf32>
    %c0_3 = arith.constant 0 : index
    %c3 = arith.constant 3 : index
    %3 = vector.load %arg1[%c0_3, %c3] : memref<8x4xf32, #tpu.memory_space<vmem>>, vector<8x1xf32>
    %c0_4 = arith.constant 0 : index
    %c0_5 = arith.constant 0 : index
    %4 = vector.load %arg0[%c0_4, %c0_5] : memref<8x512xf32, #tpu.memory_space<vmem>>, vector<8x256xf32>
    %c0_6 = arith.constant 0 : index
    %c256 = arith.constant 256 : index
    %5 = vector.load %arg0[%c0_6, %c256] : memref<8x512xf32, #tpu.memory_space<vmem>>, vector<8x256xf32>
    %cst = arith.constant 2.000000e+00 : f32
    %6 = vector.broadcast %cst : f32 to vector<8x256xf32>
    %7 = arith.mulf %4, %6 : vector<8x256xf32>
    %cst_7 = arith.constant 1.000000e+00 : f32
    %8 = vector.broadcast %cst_7 : f32 to vector<8x256xf32>
    %9 = arith.subf %7, %8 : vector<8x256xf32>
    %10 = vector.broadcast %0 : vector<8x1xf32> to vector<8x256xf32>
    %11 = arith.mulf %10, %9 : vector<8x256xf32>
    %12 = vector.broadcast %1 : vector<8x1xf32> to vector<8x256xf32>
    %13 = arith.mulf %12, %5 : vector<8x256xf32>
    %14 = arith.addf %11, %13 : vector<8x256xf32>
    %15 = vector.broadcast %0 : vector<8x1xf32> to vector<8x256xf32>
    %16 = arith.mulf %15, %5 : vector<8x256xf32>
    %17 = vector.broadcast %1 : vector<8x1xf32> to vector<8x256xf32>
    %18 = arith.mulf %17, %9 : vector<8x256xf32>
    %19 = arith.subf %16, %18 : vector<8x256xf32>
    %c0_8 = arith.constant 0 : index
    %c0_9 = arith.constant 0 : index
    %20 = vector.load %arg2[%c0_8, %c0_9] : memref<8x8xf32, #tpu.memory_space<vmem>>, vector<8x8xf32>
    %cst_10 = arith.constant dense<0.000000e+00> : vector<8x256xf32>
    %21 = tpu.matmul %20, %14, %cst_10 {dimension_numbers = #tpu.dot_dimension_numbers<[1], [0], [0], [1], [0, 0, 1, 1], [], []>} : vector<8x8xf32>, vector<8x256xf32>, vector<8x256xf32> -> vector<8x256xf32>
    %22 = vector.broadcast %3 : vector<8x1xf32> to vector<8x256xf32>
    %23 = arith.subf %22, %19 : vector<8x256xf32>
    %24 = arith.addf %21, %23 : vector<8x256xf32>
    %25 = arith.mulf %24, %24 : vector<8x256xf32>
    %cst_11 = arith.constant dense<0.000000e+00> : vector<8xf32>
    %26 = vector.multi_reduction <add>, %25, %cst_11 [1] : vector<8x256xf32> to vector<8xf32>
    %27 = vector.shape_cast %26 : vector<8xf32> to vector<8x1xf32>
    %28 = arith.mulf %27, %2 : vector<8x1xf32>
    %29 = vector.shape_cast %28 : vector<8x1xf32> to vector<1x8x1xf32>
    %cst_12 = arith.constant dense<0.000000e+00> : vector<1xf32>
    %30 = vector.multi_reduction <add>, %29, %cst_12 [1, 2] : vector<1x8x1xf32> to vector<1xf32>
    %31 = vector.shape_cast %30 : vector<1xf32> to vector<1x1x1xf32>
    %32 = vector.extract %31[0, 0, 0] : f32 from vector<1x1x1xf32>
    %cst_13 = arith.constant 4.8828125E-4 : f32
    %33 = arith.mulf %32, %cst_13 : f32
    %c0_14 = arith.constant 0 : index
    %c0_15 = arith.constant 0 : index
    %34 = memref.load %arg3[%c0_14, %c0_15] : memref<1x1xf32, #tpu.memory_space<smem>>
    memref.store %33, %arg3[%c0_14, %c0_15] : memref<1x1xf32, #tpu.memory_space<smem>>
    return
  }
}

</mosaic_0001>

<bundles_post_ra>
// kernel: gaussian_diffusion_forward.1
= control target key start
LH: loop header
LB: loop body
LE: loop exit
PB: predicated region body
PF: predicated region fallthrough
CT: control target
= control target key end

     0   :  { %v191_v1 = vmov 0   ;;  %v192_v2 = vmov 3   ;;  %s247_s0 = inlined_call_operand.vmem [shape: f32[8,512], index: 0, kind: input, shape index: {}]   ;;  %s248_s1 = inlined_call_operand.vmem [shape: f32[8,4], index: 1, kind: input, shape index: {}]   ;;  %s249_s2 = inlined_call_operand.vmem [shape: f32[8,8], index: 2, kind: input, shape index: {}]   ;;  %s250_s3 = inlined_call_operand.hbm [shape: f32[1,1], index: 3, kind: output, shape index: {}]  }
   0x1   :  { %v15_v0 = vld [vmem:[%s248_s1] sm:$0xff]  ;;  %175 = vset.pattern.permute.xlu0 %v191_v1  ;;  %177 = vset.pattern.permute.xlu1 %v192_v2 }
   0x2   :  { %8 = vsyncpa [#allocation3], 0  ;;  %26 = vperm.xlu0 %175, %v15_v0   ;;  %47 = vperm.xlu1 %177, %v15_v0   ;;  %v193_v3 = vmov 1   ;;  %v194_v4 = vmov 0.0   ;;  %v16_v5 = vld [vmem:[%s247_s0] sm:$0xff]  ;;  %v17_v6 = vld [vmem:[%s247_s0 + $0x8] sm:$0xff] }
   0x3   :  { %120 = vmatprep.mubr.f32.mxu0 %v194_v4  ;;  %v20_v7 = vmul.f32 2.0, %v16_v5  ;;  %v21_v8 = vmul.f32 2.0, %v17_v6  ;;  %v18_v9 = vld [vmem:[%s247_s0 + $0x10] sm:$0xff]  ;;  %v19_v10 = vld [vmem:[%s247_s0 + $0x18] sm:$0xff]  ;;  %v45_v27 = vld [vmem:[%s249_s2] sm:$0xff]  ;;  %vm52_vm0 = vcmask 64512  }
   0x4   :  { %s195_s0 = smov 126   ;;  %vm137_vm1 = vcmask 7168   ;;  %s179_s26 = scalar_lea.hbm %s250_s3, 16 }
   0x5   :  { %v164_v12 = vadd.f32 -1.0, %v20_v7  ;;  %v165_v13 = vadd.f32 -1.0, %v21_v8  ;;  %p180_p0 = scmp.ne.s32.totalorder %s250_s3, %s179_s26  ;;  %p183_p1 = scmp.lt.u32.totalorder %s179_s26, %s250_s3 }
   0x6   :  { %176 = vset.pattern.permute.xlu0 %v193_v3 }
   0x7   :  { %32 = vperm.xlu0 %176, %v15_v0   ;;  %p185_p2 = pnand %p183_p1, %p180_p0 }
   0xb   :  { %178 = vset.pattern.permute.xlu0 %v192_v2 }
  0x81   :  { %v27_v11 = vpop.permute.xlu0 %26  ;;  %v48_v28 = vpop.permute.xlu1 %47 }
  0x82   :  { %v39_v14 = vmul.f32 %v27_v11, %v18_v9  ;;  %v40_v15 = vmul.f32 %v27_v11, %v19_v10  ;;  %v30_v17 = vmul.f32 %v165_v13, %v27_v11  ;;  %v29_v18 = vmul.f32 %v164_v12, %v27_v11 }
  0x86   :  { %v33_v16 = vpop.permute.xlu0 %32 }
  0x87   :  { %v41_v19 = vmul.f32 %v164_v12, %v33_v16  ;;  %v42_v20 = vmul.f32 %v165_v13, %v33_v16  ;;  %v36_v21 = vmul.f32 %v33_v16, %v19_v10  ;;  %v35_v22 = vmul.f32 %v33_v16, %v18_v9 }
  0x89   :  { %v43_v23 = vsub.f32 %v39_v14, %v41_v19  ;;  %v44_v24 = vsub.f32 %v40_v15, %v42_v20  ;;  %v38_v25 = vadd.f32 %v36_v21, %v30_v17  ;;  %v37_v26 = vadd.f32 %v35_v22, %v29_v18 }
  0x8b   :  { %56 = vmatprep.subr.mxu0 %v38_v25  ;;  %v50_v29 = vsub.f32 %v48_v28, %v43_v23  ;;  %v51_v30 = vsub.f32 %v48_v28, %v44_v24 }
  0x8c   :  { %57 = vmatpush1.msra.mxu0 %v37_v26 }
  0x8d   :  { %166 = vmatmul.mubr.msk.f32.vlgmr.msra.gmra.mrb[0].mxu0 %vm52_vm0, %v45_v27 }
 0x160   :  { %v122_v31 = vpop.f32.mrb[0].mxu0 }
 0x161   :  { %v123_v32 = vadd.f32 %v122_v31, %v50_v29  ;;  %v124_v33 = vpop.f32.mrb[1].mxu0 }
 0x162   :  { %v125_v34 = vadd.f32 %v124_v33, %v51_v30 }
 0x163   :  { %v127_v35 = vmul.f32 %v123_v32, %v123_v32 }
 0x164   :  { %v128_v36 = vmul.f32 %v125_v34, %v125_v34 }
 0x166   :  { %v129_v37 = vadd.f32 %v128_v36, %v127_v35 }
 0x168   :  { %130 = vadd.xlane.f32.xlu1 %v129_v37 }
 0x1f5   :  { %v131_v38 = vpop.xlane.xlu1 %130 }
 0x1f6   :  { %v132_v39 = vmul.f32 %v131_v38, %v15_v0 }
 0x1f8   :  { %134 = vrot.lane.b32.xlu0 %v132_v39, %s195_s0 }
 0x26a   :  { %v135_v40 = vpop.permute.xlu0 %134 }
 0x26b   :  { %v138_v41 = vsel %vm137_vm1, %v135_v40, 0.0 }
 0x26c   :  { %139 = vadd.xlane.f32.xlu0 %v138_v41 }
 0x2f9   :  { %v140_v42 = vpop.xlane.xlu0 %139 }
 0x2fa   :  { %v141_v43 = vrot.slane %v140_v42, 4 }
 0x2fc   :  { %v142_v44 = vadd.f32 %v141_v43, %v140_v42 }
 0x2fe   :  { %v143_v45 = vrot.slane %v142_v44, 2 }
 0x300   :  { %v144_v46 = vadd.f32 %v143_v45, %v142_v44 }
 0x302   :  { %v145_v47 = vrot.slane %v144_v46, 1 }
 0x304   :  { %v146_v48 = vadd.f32 %v145_v47, %v144_v46 }
 0x306   :  { %167 = vpush %v146_v48 }
 0x337   :  { %s168_s2 = spop %167 }
 0x338   :  { %s148_s23 = smul.f32 0.00048828125, %s168_s2 }
 0x33a   :  { %150 = sst [smem:[#allocation2]] %s148_s23 }
 0x33b   :  { %188 = shalt.err (!%p185_p2)
}
 0x33c   :  { %s196_s4 = smov [#allocation2]  }
 0x33d   :  { %158 = dma.smem_to_hbm %s196_s4, 16, %s250_s3, [#allocation3]  }
 0x33e   :  { %189 = dma.done.wait [#allocation3], 16  }
 0x33f   :  { %190 = vsyncadd [#allocation3], 4294967280 }
 0x340   :  { %162 = sfence }
 0x341   :  { %163 = vsyncpa [#allocation3], 1 }

</bundles_post_ra>
